<compile_context>
chip_gen: v7x
topology: tpu7x:2x2x1
jax: 0.10.0
libtpu: 0.0.40
codegen_flags: <defaults>
</compile_context>

<pallas_src>
import functools

import jax
import jax.numpy as jnp
from jax.experimental import pallas as pl
from jax.experimental.pallas import tpu as pltpu

LANES = 128
SUBLANES = 8
DEFAULT_TILE_ROWS = 2048   # (2048,128) f32 tile = 1 MiB; 5 double-buffered streams ~5.5 MiB VMEM


def _default_num_splits() -> int:
    """1 split on single-TensorCore chips (v5e/v6e); 2 on megacore parts (v4/v5p/v7x)."""
    try:
        kind = jax.devices()[0].device_kind.lower()
        if any(s in kind for s in ("v5e", "v5 lite", "v5lite", "v6e", "v6 lite", "v6lite")):
            return 1
    except Exception:
        pass
    return 2


def _nonzero(x):
    # bool passes through; int8/int32/float labels & masks compare against 0.
    return x if x.dtype == jnp.bool_ else (x != 0)


def _bce_masked_kernel(ph_ref, pt_ref, yh_ref, yt_ref, m_ref,
                       num_ref, cnt_ref, acc_num, acc_cnt,
                       *, rows, tile_r, tiles_per_split):
    c = pl.program_id(0)          # split ("parallel" -> megacore sharding)
    i = pl.program_id(1)          # tile within split ("arbitrary" reduction axis)

    @pl.when(i == 0)
    def _():
        acc_num[...] = jnp.zeros_like(acc_num)
        acc_cnt[...] = jnp.zeros_like(acc_cnt)

    # Logical row index of every element in this tile.  Rows >= `rows` are either
    # HBM-edge garbage (partial last block) or a clamped re-read of the last block
    # (overshooting grid step) and must not contribute.
    base_row = (c * tiles_per_split + i) * tile_r
    row_idx = base_row + jax.lax.broadcasted_iota(jnp.int32, (tile_r, LANES), 0)
    valid = jnp.logical_and(_nonzero(m_ref[...]), row_idx < rows)

    # Zero invalid logits *before* the transcendental so garbage / padding can never
    # poison the sums (robust masked_select semantics).
    ph = jnp.where(valid, ph_ref[...].astype(jnp.float32), 0.0)
    pt = jnp.where(valid, pt_ref[...].astype(jnp.float32), 0.0)

    def bce_with_logits(x, y_ref):
        # PyTorch-stable form: max(x,0) - x*y + log1p(exp(-|x|)).
        # y in {0,1} -> x*y == where(y != 0, x, 0): skips the int->f32 convert + mul.
        return (jnp.maximum(x, 0.0)
                - jnp.where(_nonzero(y_ref[...]), x, 0.0)
                + jnp.log1p(jnp.exp(-jnp.abs(x))))

    contrib = jnp.where(valid,
                        bce_with_logits(ph, yh_ref) + bce_with_logits(pt, yt_ref),
                        0.0)
    counts = jnp.where(valid, 1.0, 0.0)

    # Fold the (tile_r,128) tile into single-vreg (8,128) accumulators: the reshape
    # only splits the sublane axis (free re-tiling) and the sum over axis 0 is pure
    # VALU vreg adds -- no cross-lane (XLU) work anywhere in the kernel.
    acc_num[...] += contrib.reshape(tile_r // SUBLANES, SUBLANES, LANES).sum(axis=0)
    acc_cnt[...] += counts.reshape(tile_r // SUBLANES, SUBLANES, LANES).sum(axis=0)

    @pl.when(i == pl.num_programs(1) - 1)
    def _():
        # Write the raw (8,128) partials; the tiny final reduce + divide live in the
        # wrapper.
        num_ref[...] = acc_num[...]
        cnt_ref[...] = acc_cnt[...]


def local_loss_new(logits, fo_indicator, masks,
                   tile_rows=DEFAULT_TILE_ROWS, num_splits=None):
    """Mirrors LocalLossNew(ml_loss=False).forward(logits, fo_indicator, masks)."""
    span, ph, pt = logits                        # span logits unused by this loss
    spans_ind, ph_ind, pt_ind = fo_indicator     # spans_ind unused by this loss
    (mask, maskarc, maskspan, mask2o_pspan,
     mask2o_psib, mask2o_pcop, span_mask) = masks   # only maskarc is used

    if num_splits is None:
        num_splits = _default_num_splits()

    n = ph.size
    # Lane-dense flattening in native dtypes (no casts).  Pad only what the (rows,128)
    # reshape needs: a multiple of 8*128 elements.  Padded mask bits are 0 -> inert.
    chunk = SUBLANES * LANES
    n_pad = -(-n // chunk) * chunk
    pad = n_pad - n
    rows = n_pad // LANES                        # multiple of 8

    def prep(x):
        x = x.reshape(-1)
        if pad:
            x = jnp.pad(x, (0, pad))
        return x.reshape(rows, LANES)

    ph2, pt2, yh2, yt2, m2 = (prep(ph), prep(pt), prep(ph_ind), prep(pt_ind), prep(maskarc))

    tile_r = max(SUBLANES, min((tile_rows // SUBLANES) * SUBLANES, rows))
    total_tiles = -(-rows // tile_r)             # cdiv
    num_splits = max(1, min(num_splits, total_tiles))
    g = -(-total_tiles // num_splits)            # tiles per split
    last_block = total_tiles - 1

    # Clamp so no block ever *starts* past the array; overshooting grid steps re-read
    # the last block and are fully neutralised by the in-kernel row-index mask.
    in_map = lambda c, i: (jnp.minimum(c * g + i, last_block), 0)
    out_map = lambda c, i: (c, 0, 0)

    kernel = functools.partial(_bce_masked_kernel,
                               rows=rows, tile_r=tile_r, tiles_per_split=g)

    bytes_in = sum(int(x.size) * x.dtype.itemsize for x in (ph2, pt2, yh2, yt2, m2))
    bytes_out = 2 * num_splits * SUBLANES * LANES * 4
    cost = pl.CostEstimate(flops=20 * n_pad, transcendentals=4 * n_pad,
                           bytes_accessed=bytes_in + bytes_out)

    num, cnt = pl.pallas_call(
        kernel,
        out_shape=(jax.ShapeDtypeStruct((num_splits, SUBLANES, LANES), jnp.float32),
                   jax.ShapeDtypeStruct((num_splits, SUBLANES, LANES), jnp.float32)),
        grid_spec=pltpu.PrefetchScalarGridSpec(
            num_scalar_prefetch=0,
            grid=(num_splits, g),
            in_specs=[pl.BlockSpec((tile_r, LANES), in_map) for _ in range(5)],
            out_specs=(pl.BlockSpec((None, SUBLANES, LANES), out_map),
                       pl.BlockSpec((None, SUBLANES, LANES), out_map)),
            scratch_shapes=[pltpu.VMEM((SUBLANES, LANES), jnp.float32),
                            pltpu.VMEM((SUBLANES, LANES), jnp.float32)]),
        compiler_params=pltpu.CompilerParams(
            dimension_semantics=("parallel", "arbitrary")),
        cost_estimate=cost,
    )(ph2, pt2, yh2, yt2, m2)

    # NOTE: an all-False maskarc yields NaN, matching PyTorch's mean over an empty
    # masked_select.
    return jnp.sum(num) / jnp.sum(cnt)


if __name__ == "__main__":
    key = jax.random.PRNGKey(0)
    B, T = 2, 16
    k1, k2, k3, k4, k5 = jax.random.split(key, 5)

    ph = jax.random.normal(k1, (B, T, T), dtype=jnp.float32)
    pt = jax.random.normal(k2, (B, T, T), dtype=jnp.float32)
    span = jnp.zeros((B, T, T), jnp.float32)                     # unused by the loss
    ph_ind = (jax.random.uniform(k3, (B, T, T)) > 0.5).astype(jnp.int8)
    pt_ind = (jax.random.uniform(k4, (B, T, T)) > 0.5).astype(jnp.int8)
    spans_ind = jnp.zeros((B, T, T), jnp.int8)                   # unused by the loss
    maskarc = jax.random.uniform(k5, (B, T, T)) > 0.3            # bool, passed as-is
    dummy = jnp.ones((B, T, T), dtype=bool)
    masks = [dummy, maskarc, dummy, dummy, dummy, dummy, dummy]

    loss = local_loss_new((span, ph, pt), (spans_ind, ph_ind, pt_ind), masks)
    loss = jax.block_until_ready(loss)

    # pure-JAX reference for correctness
    def bce(x, y):
        return jnp.maximum(x, 0.0) - x * y + jnp.log1p(jnp.exp(-jnp.abs(x)))

    m = maskarc.astype(jnp.float32)
    ref = (jnp.sum(bce(ph, ph_ind.astype(jnp.float32)) * m)
           + jnp.sum(bce(pt, pt_ind.astype(jnp.float32)) * m)) / jnp.sum(m)
    assert jnp.allclose(loss, ref, rtol=1e-5, atol=1e-5), (float(loss), float(ref))

    print("KERNEL_OK")
</pallas_src>

<mosaic_0001>
module attributes {stable_mosaic.version = 11 : i64} {
  func.func @_bce_masked_kernel(%arg0: i32, %arg1: i32, %arg2: memref<8x128xf32, #tpu.memory_space<vmem>>, %arg3: memref<8x128xf32, #tpu.memory_space<vmem>>, %arg4: memref<8x128xi8, #tpu.memory_space<vmem>>, %arg5: memref<8x128xi8, #tpu.memory_space<vmem>>, %arg6: memref<8x128xi32, #tpu.memory_space<vmem>>, %arg7: memref<1x8x128xf32, #tpu.memory_space<vmem>>, %arg8: memref<1x8x128xf32, #tpu.memory_space<vmem>>, %arg9: memref<8x128xf32, #tpu.memory_space<vmem>>, %arg10: memref<8x128xf32, #tpu.memory_space<vmem>>) attributes {dimension_semantics = [#tpu.dimension_semantics<parallel>, #tpu.dimension_semantics<arbitrary>], iteration_bounds = array<i64: 1, 1>, scalar_prefetch = 0 : i64, scratch_operands = 2 : i64, tpu.core_type = #tpu.core_type<tc>, window_params = [{transform_indices = @transform_0, window_bounds = array<i64: 8, 128>}, {transform_indices = @transform_1, window_bounds = array<i64: 8, 128>}, {transform_indices = @transform_2, window_bounds = array<i64: 8, 128>}, {transform_indices = @transform_3, window_bounds = array<i64: 8, 128>}, {transform_indices = @transform_4, window_bounds = array<i64: 8, 128>}, {transform_indices = @transform_5, window_bounds = array<i64: 1, 8, 128>}, {transform_indices = @transform_6, window_bounds = array<i64: 1, 8, 128>}]} {
    %c0_i32 = arith.constant 0 : i32
    %0 = arith.cmpi eq, %arg1, %c0_i32 : i32
    %1 = arith.extui %0 : i1 to i32
    %c0_i32_0 = arith.constant 0 : i32
    %2 = arith.cmpi ne, %1, %c0_i32_0 : i32
    scf.if %2 {
      %cst_35 = arith.constant 0.000000e+00 : f32
      %67 = vector.broadcast %cst_35 : f32 to vector<8x128xf32>
      %c0_36 = arith.constant 0 : index
      %c0_37 = arith.constant 0 : index
      %68 = vector.load %arg9[%c0_36, %c0_37] : memref<8x128xf32, #tpu.memory_space<vmem>>, vector<8x128xf32>
      tpu.vector_store %arg9[%c0_36, %c0_37], %67 {strides = array<i32>} : memref<8x128xf32, #tpu.memory_space<vmem>>, vector<8x128xf32>,
      %cst_38 = arith.constant 0.000000e+00 : f32
      %69 = vector.broadcast %cst_38 : f32 to vector<8x128xf32>
      %c0_39 = arith.constant 0 : index
      %c0_40 = arith.constant 0 : index
      %70 = vector.load %arg10[%c0_39, %c0_40] : memref<8x128xf32, #tpu.memory_space<vmem>>, vector<8x128xf32>
      tpu.vector_store %arg10[%c0_39, %c0_40], %69 {strides = array<i32>} : memref<8x128xf32, #tpu.memory_space<vmem>>, vector<8x128xf32>,
    } else {
    }
    %c1_i32 = arith.constant 1 : i32
    %3 = arith.muli %arg0, %c1_i32 : i32
    %4 = arith.addi %3, %arg1 : i32
    %c8_i32 = arith.constant 8 : i32
    %5 = arith.muli %4, %c8_i32 : i32
    %6 = tpu.iota {dimensions = array<i32: 0>} : vector<8x128xi32>
    %7 = vector.broadcast %5 : i32 to vector<8x128xi32>
    %8 = arith.addi %7, %6 : vector<8x128xi32>
    %c0 = arith.constant 0 : index
    %c0_1 = arith.constant 0 : index
    %9 = vector.load %arg6[%c0, %c0_1] : memref<8x128xi32, #tpu.memory_space<vmem>>, vector<8x128xi32>
    %cst = arith.constant dense<0> : vector<8x128xi32>
    %10 = arith.cmpi ne, %9, %cst : vector<8x128xi32>
    %c8_i32_2 = arith.constant 8 : i32
    %11 = vector.broadcast %c8_i32_2 : i32 to vector<8x128xi32>
    %12 = arith.cmpi slt, %8, %11 : vector<8x128xi32>
    %13 = arith.andi %10, %12 : vector<8x128xi1>
    %c0_3 = arith.constant 0 : index
    %c0_4 = arith.constant 0 : index
    %14 = vector.load %arg2[%c0_3, %c0_4] : memref<8x128xf32, #tpu.memory_space<vmem>>, vector<8x128xf32>
    %cst_5 = arith.constant 0.000000e+00 : f32
    %15 = vector.broadcast %cst_5 : f32 to vector<8x128xf32>
    %16 = arith.select %13, %14, %15 : vector<8x128xi1>, vector<8x128xf32>
    %c0_6 = arith.constant 0 : index
    %c0_7 = arith.constant 0 : index
    %17 = vector.load %arg3[%c0_6, %c0_7] : memref<8x128xf32, #tpu.memory_space<vmem>>, vector<8x128xf32>
    %cst_8 = arith.constant 0.000000e+00 : f32
    %18 = vector.broadcast %cst_8 : f32 to vector<8x128xf32>
    %19 = arith.select %13, %17, %18 : vector<8x128xi1>, vector<8x128xf32>
    %cst_9 = arith.constant 0.000000e+00 : f32
    %20 = vector.broadcast %cst_9 : f32 to vector<8x128xf32>
    %21 = arith.maximumf %16, %20 : vector<8x128xf32>
    %c0_10 = arith.constant 0 : index
    %c0_11 = arith.constant 0 : index
    %22 = vector.load %arg4[%c0_10, %c0_11] : memref<8x128xi8, #tpu.memory_space<vmem>>, vector<8x128xi8>
    %c0_i8 = arith.constant 0 : i8
    %23 = vector.broadcast %c0_i8 : i8 to vector<8x128xi8>
    %24 = arith.cmpi ne, %22, %23 : vector<8x128xi8>
    %cst_12 = arith.constant 0.000000e+00 : f32
    %25 = vector.broadcast %cst_12 : f32 to vector<8x128xf32>
    %26 = arith.select %24, %16, %25 : vector<8x128xi1>, vector<8x128xf32>
    %27 = arith.subf %21, %26 : vector<8x128xf32>
    %28 = math.absf %16 : vector<8x128xf32>
    %cst_13 = arith.constant 0.000000e+00 : f32
    %29 = vector.broadcast %cst_13 : f32 to vector<8x128xf32>
    %30 = arith.subf %29, %28 : vector<8x128xf32>
    %31 = math.exp %30 : vector<8x128xf32>
    %32 = math.log1p %31 : vector<8x128xf32>
    %33 = arith.addf %27, %32 : vector<8x128xf32>
    %cst_14 = arith.constant 0.000000e+00 : f32
    %34 = vector.broadcast %cst_14 : f32 to vector<8x128xf32>
    %35 = arith.maximumf %19, %34 : vector<8x128xf32>
    %c0_15 = arith.constant 0 : index
    %c0_16 = arith.constant 0 : index
    %36 = vector.load %arg5[%c0_15, %c0_16] : memref<8x128xi8, #tpu.memory_space<vmem>>, vector<8x128xi8>
    %c0_i8_17 = arith.constant 0 : i8
    %37 = vector.broadcast %c0_i8_17 : i8 to vector<8x128xi8>
    %38 = arith.cmpi ne, %36, %37 : vector<8x128xi8>
    %cst_18 = arith.constant 0.000000e+00 : f32
    %39 = vector.broadcast %cst_18 : f32 to vector<8x128xf32>
    %40 = arith.select %38, %19, %39 : vector<8x128xi1>, vector<8x128xf32>
    %41 = arith.subf %35, %40 : vector<8x128xf32>
    %42 = math.absf %19 : vector<8x128xf32>
    %cst_19 = arith.constant 0.000000e+00 : f32
    %43 = vector.broadcast %cst_19 : f32 to vector<8x128xf32>
    %44 = arith.subf %43, %42 : vector<8x128xf32>
    %45 = math.exp %44 : vector<8x128xf32>
    %46 = math.log1p %45 : vector<8x128xf32>
    %47 = arith.addf %41, %46 : vector<8x128xf32>
    %48 = arith.addf %33, %47 : vector<8x128xf32>
    %cst_20 = arith.constant 0.000000e+00 : f32
    %49 = vector.broadcast %cst_20 : f32 to vector<8x128xf32>
    %50 = arith.select %13, %48, %49 : vector<8x128xi1>, vector<8x128xf32>
    %cst_21 = arith.constant 1.000000e+00 : f32
    %cst_22 = arith.constant 0.000000e+00 : f32
    %51 = vector.broadcast %cst_21 : f32 to vector<8x128xf32>
    %52 = vector.broadcast %cst_22 : f32 to vector<8x128xf32>
    %53 = arith.select %13, %51, %52 : vector<8x128xi1>, vector<8x128xf32>
    %c0_23 = arith.constant 0 : index
    %c0_24 = arith.constant 0 : index
    %54 = vector.load %arg9[%c0_23, %c0_24] : memref<8x128xf32, #tpu.memory_space<vmem>>, vector<8x128xf32>
    %55 = vector.shape_cast %50 : vector<8x128xf32> to vector<1x8x128xf32>
    %cst_25 = arith.constant dense<0.000000e+00> : vector<8x128xf32>
    %56 = vector.multi_reduction <add>, %55, %cst_25 [0] : vector<1x8x128xf32> to vector<8x128xf32>
    %57 = arith.addf %54, %56 : vector<8x128xf32>
    %c0_26 = arith.constant 0 : index
    %c0_27 = arith.constant 0 : index
    %58 = vector.load %arg9[%c0_26, %c0_27] : memref<8x128xf32, #tpu.memory_space<vmem>>, vector<8x128xf32>
    tpu.vector_store %arg9[%c0_26, %c0_27], %57 {strides = array<i32>} : memref<8x128xf32, #tpu.memory_space<vmem>>, vector<8x128xf32>,
    %c0_28 = arith.constant 0 : index
    %c0_29 = arith.constant 0 : index
    %59 = vector.load %arg10[%c0_28, %c0_29] : memref<8x128xf32, #tpu.memory_space<vmem>>, vector<8x128xf32>
    %60 = vector.shape_cast %53 : vector<8x128xf32> to vector<1x8x128xf32>
    %cst_30 = arith.constant dense<0.000000e+00> : vector<8x128xf32>
    %61 = vector.multi_reduction <add>, %60, %cst_30 [0] : vector<1x8x128xf32> to vector<8x128xf32>
    %62 = arith.addf %59, %61 : vector<8x128xf32>
    %c0_31 = arith.constant 0 : index
    %c0_32 = arith.constant 0 : index
    %63 = vector.load %arg10[%c0_31, %c0_32] : memref<8x128xf32, #tpu.memory_space<vmem>>, vector<8x128xf32>
    tpu.vector_store %arg10[%c0_31, %c0_32], %62 {strides = array<i32>} : memref<8x128xf32, #tpu.memory_space<vmem>>, vector<8x128xf32>,
    %c0_i32_33 = arith.constant 0 : i32
    %64 = arith.cmpi eq, %arg1, %c0_i32_33 : i32
    %65 = arith.extui %64 : i1 to i32
    %c0_i32_34 = arith.constant 0 : i32
    %66 = arith.cmpi ne, %65, %c0_i32_34 : i32
    scf.if %66 {
      %c0_35 = arith.constant 0 : index
      %c0_36 = arith.constant 0 : index
      %67 = vector.load %arg9[%c0_35, %c0_36] : memref<8x128xf32, #tpu.memory_space<vmem>>, vector<8x128xf32>
      %c0_37 = arith.constant 0 : index
      %c0_38 = arith.constant 0 : index
      %c0_39 = arith.constant 0 : index
      %68 = vector.load %arg7[%c0_37, %c0_38, %c0_39] : memref<1x8x128xf32, #tpu.memory_space<vmem>>, vector<1x8x128xf32>
      %69 = vector.shape_cast %68 : vector<1x8x128xf32> to vector<8x128xf32>
      %70 = vector.shape_cast %67 : vector<8x128xf32> to vector<1x8x128xf32>
      tpu.vector_store %arg7[%c0_37, %c0_38, %c0_39], %70 {strides = array<i32>} : memref<1x8x128xf32, #tpu.memory_space<vmem>>, vector<1x8x128xf32>,
      %c0_40 = arith.constant 0 : index
      %c0_41 = arith.constant 0 : index
      %71 = vector.load %arg10[%c0_40, %c0_41] : memref<8x128xf32, #tpu.memory_space<vmem>>, vector<8x128xf32>
      %c0_42 = arith.constant 0 : index
      %c0_43 = arith.constant 0 : index
      %c0_44 = arith.constant 0 : index
      %72 = vector.load %arg8[%c0_42, %c0_43, %c0_44] : memref<1x8x128xf32, #tpu.memory_space<vmem>>, vector<1x8x128xf32>
      %73 = vector.shape_cast %72 : vector<1x8x128xf32> to vector<8x128xf32>
      %74 = vector.shape_cast %71 : vector<8x128xf32> to vector<1x8x128xf32>
      tpu.vector_store %arg8[%c0_42, %c0_43, %c0_44], %74 {strides = array<i32>} : memref<1x8x128xf32, #tpu.memory_space<vmem>>, vector<1x8x128xf32>,
    } else {
    }
    return
  }
  func.func @transform_0(%arg0: i32, %arg1: i32) -> (i32, i32) {
    %c1_i32 = arith.constant 1 : i32
    %0 = arith.muli %arg0, %c1_i32 : i32
    %1 = arith.addi %0, %arg1 : i32
    %c0_i32 = arith.constant 0 : i32
    %2 = arith.minsi %1, %c0_i32 : i32
    %c0_i32_0 = arith.constant 0 : i32
    %c0_i32_1 = arith.constant 0 : i32
    return %2, %c0_i32_0 : i32, i32
  }
  func.func @transform_1(%arg0: i32, %arg1: i32) -> (i32, i32) {
    %c1_i32 = arith.constant 1 : i32
    %0 = arith.muli %arg0, %c1_i32 : i32
    %1 = arith.addi %0, %arg1 : i32
    %c0_i32 = arith.constant 0 : i32
    %2 = arith.minsi %1, %c0_i32 : i32
    %c0_i32_0 = arith.constant 0 : i32
    %c0_i32_1 = arith.constant 0 : i32
    return %2, %c0_i32_0 : i32, i32
  }
  func.func @transform_2(%arg0: i32, %arg1: i32) -> (i32, i32) {
    %c1_i32 = arith.constant 1 : i32
    %0 = arith.muli %arg0, %c1_i32 : i32
    %1 = arith.addi %0, %arg1 : i32
    %c0_i32 = arith.constant 0 : i32
    %2 = arith.minsi %1, %c0_i32 : i32
    %c0_i32_0 = arith.constant 0 : i32
    %c0_i32_1 = arith.constant 0 : i32
    return %2, %c0_i32_0 : i32, i32
  }
  func.func @transform_3(%arg0: i32, %arg1: i32) -> (i32, i32) {
    %c1_i32 = arith.constant 1 : i32
    %0 = arith.muli %arg0, %c1_i32 : i32
    %1 = arith.addi %0, %arg1 : i32
    %c0_i32 = arith.constant 0 : i32
    %2 = arith.minsi %1, %c0_i32 : i32
    %c0_i32_0 = arith.constant 0 : i32
    %c0_i32_1 = arith.constant 0 : i32
    return %2, %c0_i32_0 : i32, i32
  }
  func.func @transform_4(%arg0: i32, %arg1: i32) -> (i32, i32) {
    %c1_i32 = arith.constant 1 : i32
    %0 = arith.muli %arg0, %c1_i32 : i32
    %1 = arith.addi %0, %arg1 : i32
    %c0_i32 = arith.constant 0 : i32
    %2 = arith.minsi %1, %c0_i32 : i32
    %c0_i32_0 = arith.constant 0 : i32
    %c0_i32_1 = arith.constant 0 : i32
    return %2, %c0_i32_0 : i32, i32
  }
  func.func @transform_5(%arg0: i32, %arg1: i32) -> (i32, i32, i32) {
    %c0_i32 = arith.constant 0 : i32
    %c0_i32_0 = arith.constant 0 : i32
    %c0_i32_1 = arith.constant 0 : i32
    return %arg0, %c0_i32, %c0_i32_0 : i32, i32, i32
  }
  func.func @transform_6(%arg0: i32, %arg1: i32) -> (i32, i32, i32) {
    %c0_i32 = arith.constant 0 : i32
    %c0_i32_0 = arith.constant 0 : i32
    %c0_i32_1 = arith.constant 0 : i32
    return %arg0, %c0_i32, %c0_i32_0 : i32, i32, i32
  }
}

</mosaic_0001>

<bundles_post_ra>
// kernel: tpu_custom_call.1
= control target key start
LH: loop header
LB: loop body
LE: loop exit
PB: predicated region body
PF: predicated region fallthrough
CT: control target
= control target key end

     0   :  { %12 = vsyncpa [#allocation5], 0  ;;  %s475_s0 = inlined_call_operand.vmem [shape: f32[8,128], index: 0, kind: input, shape index: {}]   ;;  %s476_s1 = inlined_call_operand.hbm [shape: f32[8,128], index: 1, kind: input, shape index: {}]   ;;  %s477_s2 = inlined_call_operand.vmem [shape: s8[8,128], index: 2, kind: input, shape index: {}]   ;;  %s478_s3 = inlined_call_operand.vmem [shape: s8[8,128], index: 3, kind: input, shape index: {}]   ;;  %s479_s4 = inlined_call_operand.vmem [shape: s32[8,128], index: 4, kind: input, shape index: {}]   ;;  %s480_s5 = inlined_call_operand.hbm [shape: f32[1,8,128], index: 5, kind: output, shape index: {0}]   ;;  %s481_s6 = inlined_call_operand.hbm [shape: f32[1,8,128], index: 6, kind: output, shape index: {1}]  }
   0x1   :  { %13 = vsyncpa [#allocation6], 0 }
   0x2   :  { %14 = vsyncpa [#allocation9], 0  ;;  %s376_s21 = smov [#allocation4]   ;;  %s304_s25 = scalar_lea.hbm %s476_s1, 128 }
   0x3   :  { %s38_s22 = sshll.u32 %s376_s21, 4  ;;  %p305_p0 = scmp.ne.s32.totalorder %s476_s1, %s304_s25  ;;  %s39_s22 = int_to_ptr.vmem [resolvable:$true] %s38_s22 }
   0x4   :  { %p308_p1 = scmp.lt.u32.totalorder %s304_s25, %s476_s1 }
   0x6   :  { %p310_p2 = pnand %p308_p1, %p305_p0 }
   0x8   :  { %313 = shalt.err (!%p310_p2)
}
   0x9   :  { %s314_s30 = scalar_lea.vmem %s39_s22, 128  ;;  %p319_p4 = scmp.lt.s32.totalorder %s39_s22, %s39_s22 }
   0xa   :  { %p315_p3 = scmp.ne.s32.totalorder %s39_s22, %s314_s30  ;;  %p320_p5 = scmp.lt.s32.totalorder %s314_s30, %s314_s30 }
   0xc   :  { %p321_p6 = por %p320_p5, %p319_p4 }
   0xe   :  { %p322_p7 = pnand %p321_p6, %p315_p3 }
  0x10   :  { %325 = shalt.err (!%p322_p7)
}
  0x11   :  { %41 = dma.hbm_to_vmem [thread:$0]  %s476_s1, 128, %s39_s22, [#allocation5]  }
  0x12   :  { %370 = dma.done.wait [#allocation5], 128  }
  0x13   :  { %371 = vsyncadd [#allocation5], 4294967168  ;;  %v431_v0 = vld [vmem:[%s479_s4] sm:$0xff]  ;;  %s377_s13 = smov [#allocation8]   ;;  %v378_v7 = vmov 0.0  }
  0x14   :  { %v170_v1 = vld [vmem:[%s475_s0] sm:$0xff]  ;;  %s252_s14 = sshll.u32 %s377_s13, 4  ;;  %vm167_vm0 = vcmp.ne.s32.totalorder %v431_v0, 0  ;;  %s253_s14 = int_to_ptr.vmem [resolvable:$true] %s252_s14 }
  0x15   :  { %v172_v2 = vld [vmem:[#allocation4] sm:$0xff]  ;;  %v171_v3 = vsel %vm167_vm0, %v170_v1, 0.0  ;;  %v220_v8 = vsel %vm167_vm0, 1.0, %v378_v7  ;;  %s326_s0 = scalar_lea.vmem %s253_s14, 128  ;;  %p331_p9 = scmp.lt.s32.totalorder %s253_s14, %s253_s14 }
  0x16   :  { %v173_v4 = vsel %vm167_vm0, %v172_v2, 0.0  ;;  %v182_v5 = vand.u32 2147483647, %v171_v3  ;;  %235 = vst [vmem:[#allocation8] sm:$0xff] %v220_v8  ;;  %p327_p8 = scmp.ne.s32.totalorder %s253_s14, %s326_s0  ;;  %p332_p10 = scmp.lt.s32.totalorder %s326_s0, %s326_s0 }
  0x17   :  { %v204_v6 = vand.u32 2147483647, %v173_v4 }
  0x18   :  { %v183_v9 = vsub.f32 0.0, %v182_v5  ;;  %p333_p11 = por %p332_p10, %p331_p9 }
  0x19   :  { %v205_v10 = vsub.f32 0.0, %v204_v6 }
  0x1a   :  { %p334_p12 = pnand %p333_p11, %p327_p8 }
  0x1c   :  { %337 = shalt.err (!%p334_p12)
}
  0x1d   :  { %s338_s15 = scalar_lea.hbm %s481_s6, 128 }
  0x1e   :  { %p339_p13 = scmp.ne.s32.totalorder %s481_s6, %s338_s15  ;;  %p342_p0 = scmp.lt.u32.totalorder %s338_s15, %s481_s6 }
  0x20   :  { %p344_p1 = pnand %p342_p0, %p339_p13 }
  0x22   :  { %347 = shalt.err (!%p344_p1)
}
  0x23   :  { %255 = dma.vmem_to_hbm [thread:$0]  %s253_s14, 128, %s481_s6, [#allocation9]   ;;  %v184_v11 = vmul.f32 1.442695, %v183_v9  ;;  %v206_v12 = vmul.f32 1.442695, %v205_v10 }
  0x24   :  { %v175_v13 = vld [vmem:[%s477_s2] sm:$0x3]  ;;  %v379_v16 = vmov 0   ;;  %v174_v27 = vmax.f32 %v171_v3, 0.0  ;;  %v196_v31 = vmax.f32 %v173_v4, 0.0  ;;  %s380_s2 = smov [#allocation7]  }
  0x25   :  { %296 = vpow2.f32 %v184_v11  ;;  %v197_v14 = vld [vmem:[%s478_s3] sm:$0x3]  ;;  %vm176_vm1 = vnez %v175_v13  ;;  %s242_s3 = sshll.u32 %s380_s2, 4  ;;  %s243_s3 = int_to_ptr.vmem [resolvable:$true] %s242_s3 }
  0x26   :  { %298 = vpow2.f32 %v206_v12  ;;  %vm198_vm2 = vnez %v197_v14  ;;  %v177_v17 = vsel %vm176_vm1, 16843009, %v379_v16  ;;  %s348_s6 = scalar_lea.vmem %s243_s3, 128  ;;  %p353_p3 = scmp.lt.s32.totalorder %s243_s3, %s243_s3 }
  0x27   :  { %v199_v20 = vsel %vm198_vm2, 16843009, %v379_v16  ;;  %v178_v22 = vunpack.c.0.s8 %v177_v17  ;;  %p349_p2 = scmp.ne.s32.totalorder %s243_s3, %s348_s6  ;;  %p354_p4 = scmp.lt.s32.totalorder %s348_s6, %s348_s6 }
  0x28   :  { %v200_v24 = vunpack.c.0.s8 %v199_v20 }
  0x29   :  { %vm179_vm3 = vcmp.ne.s32.totalorder %v178_v22, 0  ;;  %p355_p5 = por %p354_p4, %p353_p3 }
  0x2a   :  { %vm201_vm4 = vcmp.ne.s32.totalorder %v200_v24, 0  ;;  %v180_v30 = vsel %vm179_vm3, %v171_v3, 0.0 }
  0x2b   :  { %v202_v33 = vsel %vm201_vm4, %v173_v4, 0.0  ;;  %v181_v36 = vsub.f32 %v174_v27, %v180_v30  ;;  %p356_p6 = pnand %p355_p5, %p349_p2 }
  0x2c   :  { %v203_v40 = vsub.f32 %v196_v31, %v202_v33 }
  0x2f   :  { %v297_v15 = vpop.eup %296 }
  0x30   :  { %v299_v18 = vpop.eup %298  ;;  %v186_v19 = vadd.f32 1.0, %v297_v15  ;;  %v189_v23 = vmul.f32 -0.5, %v297_v15  ;;  %v192_v28 = vand.u32 2147483647, %v297_v15 }
  0x31   :  { %v208_v21 = vadd.f32 1.0, %v299_v18  ;;  %v211_v25 = vmul.f32 -0.5, %v299_v18  ;;  %v214_v32 = vand.u32 2147483647, %v299_v18 }
  0x32   :  { %300 = vlog2.f32 %v186_v19  ;;  %v190_v26 = vadd.f32 1.0, %v189_v23  ;;  %vm193_vm5 = vcmp.lt.f32.partialorder %v192_v28, 0.0004427343 }
  0x33   :  { %302 = vlog2.f32 %v208_v21  ;;  %v212_v29 = vadd.f32 1.0, %v211_v25  ;;  %vm215_vm6 = vcmp.lt.f32.partialorder %v214_v32, 0.0004427343 }
  0x34   :  { %v191_v34 = vmul.f32 %v297_v15, %v190_v26 }
  0x35   :  { %v213_v37 = vmul.f32 %v299_v18, %v212_v29 }
  0x3c   :  { %v301_v35 = vpop.eup %300 }
  0x3d   :  { %v303_v38 = vpop.eup %302  ;;  %v188_v39 = vmul.f32 0.6931472, %v301_v35 }
  0x3e   :  { %v210_v41 = vmul.f32 0.6931472, %v303_v38 }
  0x3f   :  { %v194_v42 = vsel %vm193_vm5, %v191_v34, %v188_v39 }
  0x40   :  { %v195_v43 = vadd.f32 %v194_v42, %v181_v36  ;;  %v216_v44 = vsel %vm215_vm6, %v213_v37, %v210_v41 }
  0x41   :  { %v217_v45 = vadd.f32 %v216_v44, %v203_v40 }
  0x43   :  { %v218_v46 = vadd.f32 %v217_v45, %v195_v43 }
  0x45   :  { %v219_v47 = vsel %vm167_vm0, %v218_v46, 0.0 }
  0x46   :  { %233 = vst [vmem:[#allocation7] sm:$0xff] %v219_v47 }
  0x47   :  { %359 = shalt.err (!%p356_p6)
}
  0x48   :  { %s360_s28 = scalar_lea.hbm %s480_s5, 128 }
  0x49   :  { %p361_p7 = scmp.ne.s32.totalorder %s480_s5, %s360_s28  ;;  %p364_p8 = scmp.lt.u32.totalorder %s360_s28, %s480_s5 }
  0x4b   :  { %p366_p9 = pnand %p364_p8, %p361_p7 }
  0x4d   :  { %369 = shalt.err (!%p366_p9)
}
  0x4e   :  { %245 = dma.vmem_to_hbm [thread:$0]  %s243_s3, 128, %s480_s5, [#allocation6]  }
  0x4f   :  { %372 = dma.done.wait [#allocation6], 128  }
  0x50   :  { %373 = vsyncadd [#allocation6], 4294967168 }
  0x51   :  { %374 = dma.done.wait [#allocation9], 128  }
  0x52   :  { %375 = vsyncadd [#allocation9], 4294967168 }
  0x53   :  { %262 = vsyncpa [#allocation5], 1 }
  0x54   :  { %263 = vsyncpa [#allocation6], 1 }
  0x55   :  { %264 = vsyncpa [#allocation9], 1 }

</bundles_post_ra>
